<compile_context>
chip_gen: v7x
topology: tpu7x:2x2x1
jax: 0.10.0
libtpu: 0.0.40
codegen_flags: <defaults>
</compile_context>

<pallas_src>
import jax
import jax.numpy as jnp
from jax.experimental import pallas as pl
from jax.experimental.pallas import tpu as pltpu

LANE = 128
ROWS_PER_TILE = 256   # 256*128 f32 = 128 KiB per channel plane per block


def conv1x1_hswish_kernel(x_ref, w_ref, b_ref, o_ref):
    # x_ref / o_ref: (1, 3, TS, 128) f32 VMEM blocks -- one batch element,
    # channels on a cheap leading axis, full (sublane x lane) spatial slabs.
    # w_ref: (9,) f32 SMEM, row-major (cout, cin).  b_ref: (3,) f32 SMEM.
    x0 = x_ref[0, 0, :, :]
    x1 = x_ref[0, 1, :, :]
    x2 = x_ref[0, 2, :, :]
    for co in range(3):
        t1 = (x0 * w_ref[3 * co + 0]
              + x1 * w_ref[3 * co + 1]
              + x2 * w_ref[3 * co + 2]
              + b_ref[co])
        t3 = jnp.clip(t1 + 3.0, 0.0, 6.0)            # clamp(t1 + 3, 0, 6)
        o_ref[0, co, :, :] = (t1 * t3).astype(o_ref.dtype)


@jax.jit
def model_forward(x, conv_w, conv_b):
    """x: (N, 3, H, W) float32 NCHW.  conv_w: (3, 3, 1, 1).  conv_b: (3,)."""
    N, C, H, W = x.shape
    Cout = conv_w.shape[0]

    # The conv is 1x1 and the pool is a pure ::2 subsample of the padded
    # image, so subsample first.  Surviving padded indices 0, 2, 4, ...:
    # index 0 is the zero-pad row/col, index 2k (k >= 1) is original row/col
    # 2k-1, plus a trailing zero row/col when H/W is odd.
    Ho = 1 + H // 2 + (H % 2)
    Wo = 1 + W // 2 + (W % 2)
    x_sub = x[:, :, 1::2, 1::2]
    xs = jnp.pad(x_sub, ((0, 0), (0, 0), (1, H % 2), (1, W % 2)))

    # Flatten spatial (contiguous reshape, no transpose) and fold it into
    # (rows, 128) full-lane slabs; tile rows so blocks stay ~<= 1 MiB.
    M = Ho * Wo
    rows = -(-M // LANE)
    ts = rows if rows <= ROWS_PER_TILE else ROWS_PER_TILE
    rows_pad = -(-rows // ts) * ts
    M_pad = rows_pad * LANE
    x_mat = jnp.pad(xs.reshape(N, C, M), ((0, 0), (0, 0), (0, M_pad - M)))
    x_mat = x_mat.reshape(N, C, rows_pad, LANE)

    w_flat = conv_w.reshape(Cout, C).reshape(-1)      # (9,), row-major (co, ci)

    y = pl.pallas_call(
        conv1x1_hswish_kernel,
        out_shape=jax.ShapeDtypeStruct((N, Cout, rows_pad, LANE), x.dtype),
        grid=(N, rows_pad // ts),
        in_specs=[
            pl.BlockSpec((1, C, ts, LANE), lambda n, s: (n, 0, s, 0)),
            pl.BlockSpec(memory_space=pltpu.MemorySpace.SMEM),
            pl.BlockSpec(memory_space=pltpu.MemorySpace.SMEM),
        ],
        out_specs=pl.BlockSpec((1, Cout, ts, LANE), lambda n, s: (n, 0, s, 0)),
        compiler_params=pltpu.CompilerParams(
            dimension_semantics=("parallel", "parallel")),
    )(x_mat, w_flat, conv_b)

    # Output is already in (N, Cout, spatial) order: drop the lane-pad tail
    # (which holds activation(bias) garbage) and flatten -- no transpose.
    t8 = y.reshape(N, Cout, M_pad)[:, :, :M].reshape(N, Cout * M)

    # TODO(synk): self.bn = BatchNorm2d(3) applied to the 2-D tensor t8 is a
    # shape error in PyTorch (expects 4-D, 3-channel input); the reference
    # forward raises there, so the BN step is intentionally skipped.
    return t8


def _reference(x, conv_w, conv_b):
    """Pure-JAX reference of the same math for a correctness check."""
    N, C, H, W = x.shape
    Cout = conv_w.shape[0]
    xp = jnp.pad(x, ((0, 0), (0, 0), (1, 1), (1, 1)))
    t1 = jnp.einsum("nchw,oc->nohw", xp, conv_w.reshape(Cout, C)) + \
        conv_b[None, :, None, None]
    t3 = jnp.clip(t1 + 3.0, 0.0, 6.0)
    t4 = t1 * t3
    t7 = t4[:, :, ::2, ::2]
    return t7.reshape(N, -1)


if __name__ == "__main__":
    key = jax.random.PRNGKey(0)
    kx, kw, kb = jax.random.split(key, 3)

    C = 3
    # Deterministic Conv2d(3, 3, 1) parameters (kaiming-uniform-ish bound).
    fan_in = C * 1 * 1
    bound = 1.0 / (fan_in ** 0.5)
    conv_w = jax.random.uniform(kw, (C, C, 1, 1), jnp.float32, -bound, bound)
    conv_b = jax.random.uniform(kb, (C,), jnp.float32, -bound, bound)

    # Small shape consistent with the module, plus the module's own 64x64 and
    # an odd-size case to exercise the parity/padding path.
    for (N, H, W) in [(2, 16, 16), (2, 64, 64), (1, 17, 19)]:
        kx, sub = jax.random.split(kx)
        x1 = jax.random.normal(sub, (N, C, H, W), dtype=jnp.float32)

        out = jax.block_until_ready(model_forward(x1, conv_w, conv_b))
        ref = _reference(x1, conv_w, conv_b)

        Ho = 1 + H // 2 + (H % 2)
        Wo = 1 + W // 2 + (W % 2)
        assert out.shape == (N, C * Ho * Wo), (out.shape, (N, C * Ho * Wo))
        assert jnp.allclose(out, ref, atol=1e-5, rtol=1e-5), \
            f"mismatch vs reference for shape {(N, C, H, W)}"

    print("KERNEL_OK")
</pallas_src>

<mosaic_0001>
module attributes {stable_mosaic.version = 11 : i64} {
  func.func @conv1x1_hswish_kernel(%arg0: i32, %arg1: i32, %arg2: memref<1x3x1x128xf32, #tpu.memory_space<vmem>>, %arg3: memref<9xf32, #tpu.memory_space<smem>>, %arg4: memref<3xf32, #tpu.memory_space<smem>>, %arg5: memref<1x3x1x128xf32, #tpu.memory_space<vmem>>) attributes {dimension_semantics = [#tpu.dimension_semantics<parallel>, #tpu.dimension_semantics<parallel>], iteration_bounds = array<i64: 2, 1>, scalar_prefetch = 0 : i64, scratch_operands = 0 : i64, tpu.core_type = #tpu.core_type<tc>, window_params = [{transform_indices = @transform_0, window_bounds = array<i64: 1, 3, 1, 128>}, {transform_indices = @transform_1, window_bounds = array<i64: 9>}, {transform_indices = @transform_2, window_bounds = array<i64: 3>}, {transform_indices = @transform_3, window_bounds = array<i64: 1, 3, 1, 128>}]} {
    %c0 = arith.constant 0 : index
    %c0_0 = arith.constant 0 : index
    %c0_1 = arith.constant 0 : index
    %c0_2 = arith.constant 0 : index
    %0 = vector.load %arg2[%c0, %c0_0, %c0_1, %c0_2] : memref<1x3x1x128xf32, #tpu.memory_space<vmem>>, vector<1x1x1x128xf32>
    %1 = vector.shape_cast %0 : vector<1x1x1x128xf32> to vector<1x128xf32>
    %c0_3 = arith.constant 0 : index
    %c1 = arith.constant 1 : index
    %c0_4 = arith.constant 0 : index
    %c0_5 = arith.constant 0 : index
    %2 = vector.load %arg2[%c0_3, %c1, %c0_4, %c0_5] : memref<1x3x1x128xf32, #tpu.memory_space<vmem>>, vector<1x1x1x128xf32>
    %3 = vector.shape_cast %2 : vector<1x1x1x128xf32> to vector<1x128xf32>
    %c0_6 = arith.constant 0 : index
    %c2 = arith.constant 2 : index
    %c0_7 = arith.constant 0 : index
    %c0_8 = arith.constant 0 : index
    %4 = vector.load %arg2[%c0_6, %c2, %c0_7, %c0_8] : memref<1x3x1x128xf32, #tpu.memory_space<vmem>>, vector<1x1x1x128xf32>
    %5 = vector.shape_cast %4 : vector<1x1x1x128xf32> to vector<1x128xf32>
    %c0_9 = arith.constant 0 : index
    %6 = memref.load %arg3[%c0_9] : memref<9xf32, #tpu.memory_space<smem>>
    %7 = vector.broadcast %6 : f32 to vector<1x128xf32>
    %8 = arith.mulf %1, %7 : vector<1x128xf32>
    %c1_10 = arith.constant 1 : index
    %9 = memref.load %arg3[%c1_10] : memref<9xf32, #tpu.memory_space<smem>>
    %10 = vector.broadcast %9 : f32 to vector<1x128xf32>
    %11 = arith.mulf %3, %10 : vector<1x128xf32>
    %12 = arith.addf %8, %11 : vector<1x128xf32>
    %c2_11 = arith.constant 2 : index
    %13 = memref.load %arg3[%c2_11] : memref<9xf32, #tpu.memory_space<smem>>
    %14 = vector.broadcast %13 : f32 to vector<1x128xf32>
    %15 = arith.mulf %5, %14 : vector<1x128xf32>
    %16 = arith.addf %12, %15 : vector<1x128xf32>
    %c0_12 = arith.constant 0 : index
    %17 = memref.load %arg4[%c0_12] : memref<3xf32, #tpu.memory_space<smem>>
    %18 = vector.broadcast %17 : f32 to vector<1x128xf32>
    %19 = arith.addf %16, %18 : vector<1x128xf32>
    %cst = arith.constant 3.000000e+00 : f32
    %20 = vector.broadcast %cst : f32 to vector<1x128xf32>
    %21 = arith.addf %19, %20 : vector<1x128xf32>
    %cst_13 = arith.constant 0.000000e+00 : f32
    %cst_14 = arith.constant 6.000000e+00 : f32
    %22 = vector.broadcast %cst_13 : f32 to vector<1x128xf32>
    %23 = arith.maximumf %22, %21 : vector<1x128xf32>
    %24 = vector.broadcast %cst_14 : f32 to vector<1x128xf32>
    %25 = arith.minimumf %24, %23 : vector<1x128xf32>
    %26 = arith.mulf %19, %25 : vector<1x128xf32>
    %c0_15 = arith.constant 0 : index
    %c0_16 = arith.constant 0 : index
    %c0_17 = arith.constant 0 : index
    %c0_18 = arith.constant 0 : index
    %27 = vector.load %arg5[%c0_15, %c0_16, %c0_17, %c0_18] : memref<1x3x1x128xf32, #tpu.memory_space<vmem>>, vector<1x1x1x128xf32>
    %28 = vector.shape_cast %27 : vector<1x1x1x128xf32> to vector<1x128xf32>
    %29 = vector.shape_cast %26 : vector<1x128xf32> to vector<1x1x1x128xf32>
    tpu.vector_store %arg5[%c0_15, %c0_16, %c0_17, %c0_18], %29 {strides = array<i32>} : memref<1x3x1x128xf32, #tpu.memory_space<vmem>>, vector<1x1x1x128xf32>,
    %c3 = arith.constant 3 : index
    %30 = memref.load %arg3[%c3] : memref<9xf32, #tpu.memory_space<smem>>
    %31 = vector.broadcast %30 : f32 to vector<1x128xf32>
    %32 = arith.mulf %1, %31 : vector<1x128xf32>
    %c4 = arith.constant 4 : index
    %33 = memref.load %arg3[%c4] : memref<9xf32, #tpu.memory_space<smem>>
    %34 = vector.broadcast %33 : f32 to vector<1x128xf32>
    %35 = arith.mulf %3, %34 : vector<1x128xf32>
    %36 = arith.addf %32, %35 : vector<1x128xf32>
    %c5 = arith.constant 5 : index
    %37 = memref.load %arg3[%c5] : memref<9xf32, #tpu.memory_space<smem>>
    %38 = vector.broadcast %37 : f32 to vector<1x128xf32>
    %39 = arith.mulf %5, %38 : vector<1x128xf32>
    %40 = arith.addf %36, %39 : vector<1x128xf32>
    %c1_19 = arith.constant 1 : index
    %41 = memref.load %arg4[%c1_19] : memref<3xf32, #tpu.memory_space<smem>>
    %42 = vector.broadcast %41 : f32 to vector<1x128xf32>
    %43 = arith.addf %40, %42 : vector<1x128xf32>
    %cst_20 = arith.constant 3.000000e+00 : f32
    %44 = vector.broadcast %cst_20 : f32 to vector<1x128xf32>
    %45 = arith.addf %43, %44 : vector<1x128xf32>
    %cst_21 = arith.constant 0.000000e+00 : f32
    %cst_22 = arith.constant 6.000000e+00 : f32
    %46 = vector.broadcast %cst_21 : f32 to vector<1x128xf32>
    %47 = arith.maximumf %46, %45 : vector<1x128xf32>
    %48 = vector.broadcast %cst_22 : f32 to vector<1x128xf32>
    %49 = arith.minimumf %48, %47 : vector<1x128xf32>
    %50 = arith.mulf %43, %49 : vector<1x128xf32>
    %c0_23 = arith.constant 0 : index
    %c1_24 = arith.constant 1 : index
    %c0_25 = arith.constant 0 : index
    %c0_26 = arith.constant 0 : index
    %51 = vector.load %arg5[%c0_23, %c1_24, %c0_25, %c0_26] : memref<1x3x1x128xf32, #tpu.memory_space<vmem>>, vector<1x1x1x128xf32>
    %52 = vector.shape_cast %51 : vector<1x1x1x128xf32> to vector<1x128xf32>
    %53 = vector.shape_cast %50 : vector<1x128xf32> to vector<1x1x1x128xf32>
    tpu.vector_store %arg5[%c0_23, %c1_24, %c0_25, %c0_26], %53 {strides = array<i32>} : memref<1x3x1x128xf32, #tpu.memory_space<vmem>>, vector<1x1x1x128xf32>,
    %c6 = arith.constant 6 : index
    %54 = memref.load %arg3[%c6] : memref<9xf32, #tpu.memory_space<smem>>
    %55 = vector.broadcast %54 : f32 to vector<1x128xf32>
    %56 = arith.mulf %1, %55 : vector<1x128xf32>
    %c7 = arith.constant 7 : index
    %57 = memref.load %arg3[%c7] : memref<9xf32, #tpu.memory_space<smem>>
    %58 = vector.broadcast %57 : f32 to vector<1x128xf32>
    %59 = arith.mulf %3, %58 : vector<1x128xf32>
    %60 = arith.addf %56, %59 : vector<1x128xf32>
    %c8 = arith.constant 8 : index
    %61 = memref.load %arg3[%c8] : memref<9xf32, #tpu.memory_space<smem>>
    %62 = vector.broadcast %61 : f32 to vector<1x128xf32>
    %63 = arith.mulf %5, %62 : vector<1x128xf32>
    %64 = arith.addf %60, %63 : vector<1x128xf32>
    %c2_27 = arith.constant 2 : index
    %65 = memref.load %arg4[%c2_27] : memref<3xf32, #tpu.memory_space<smem>>
    %66 = vector.broadcast %65 : f32 to vector<1x128xf32>
    %67 = arith.addf %64, %66 : vector<1x128xf32>
    %cst_28 = arith.constant 3.000000e+00 : f32
    %68 = vector.broadcast %cst_28 : f32 to vector<1x128xf32>
    %69 = arith.addf %67, %68 : vector<1x128xf32>
    %cst_29 = arith.constant 0.000000e+00 : f32
    %cst_30 = arith.constant 6.000000e+00 : f32
    %70 = vector.broadcast %cst_29 : f32 to vector<1x128xf32>
    %71 = arith.maximumf %70, %69 : vector<1x128xf32>
    %72 = vector.broadcast %cst_30 : f32 to vector<1x128xf32>
    %73 = arith.minimumf %72, %71 : vector<1x128xf32>
    %74 = arith.mulf %67, %73 : vector<1x128xf32>
    %c0_31 = arith.constant 0 : index
    %c2_32 = arith.constant 2 : index
    %c0_33 = arith.constant 0 : index
    %c0_34 = arith.constant 0 : index
    %75 = vector.load %arg5[%c0_31, %c2_32, %c0_33, %c0_34] : memref<1x3x1x128xf32, #tpu.memory_space<vmem>>, vector<1x1x1x128xf32>
    %76 = vector.shape_cast %75 : vector<1x1x1x128xf32> to vector<1x128xf32>
    %77 = vector.shape_cast %74 : vector<1x128xf32> to vector<1x1x1x128xf32>
    tpu.vector_store %arg5[%c0_31, %c2_32, %c0_33, %c0_34], %77 {strides = array<i32>} : memref<1x3x1x128xf32, #tpu.memory_space<vmem>>, vector<1x1x1x128xf32>,
    return
  }
  func.func @transform_0(%arg0: i32, %arg1: i32) -> (i32, i32, i32, i32) {
    %c0_i32 = arith.constant 0 : i32
    %c0_i32_0 = arith.constant 0 : i32
    %c0_i32_1 = arith.constant 0 : i32
    return %arg0, %c0_i32, %arg1, %c0_i32_0 : i32, i32, i32, i32
  }
  func.func @transform_1(%arg0: i32, %arg1: i32) -> i32 {
    %c0_i32 = arith.constant 0 : i32
    %c0_i32_0 = arith.constant 0 : i32
    return %c0_i32 : i32
  }
  func.func @transform_2(%arg0: i32, %arg1: i32) -> i32 {
    %c0_i32 = arith.constant 0 : i32
    %c0_i32_0 = arith.constant 0 : i32
    return %c0_i32 : i32
  }
  func.func @transform_3(%arg0: i32, %arg1: i32) -> (i32, i32, i32, i32) {
    %c0_i32 = arith.constant 0 : i32
    %c0_i32_0 = arith.constant 0 : i32
    %c0_i32_1 = arith.constant 0 : i32
    return %arg0, %c0_i32, %arg1, %c0_i32_0 : i32, i32, i32, i32
  }
}

</mosaic_0001>

<bundles_post_ra>
// kernel: model_forward.1
= control target key start
LH: loop header
LB: loop body
LE: loop exit
PB: predicated region body
PF: predicated region fallthrough
CT: control target
= control target key end

     0   :  { %8 = vsyncpa [#allocation3], 0  ;;  %s626_s0 = inlined_call_operand.vmem [shape: f32[2,3,1,128], index: 0, kind: input, shape index: {}]   ;;  %s627_s1 = inlined_call_operand.vmem [shape: f32[9], index: 1, kind: input, shape index: {}]   ;;  %s628_s2 = inlined_call_operand.vmem [shape: f32[3], index: 2, kind: input, shape index: {}]   ;;  %s629_s3 = inlined_call_operand.vmem [shape: f32[2,3,1,128], index: 3, kind: output, shape index: {}]  }
   0x1   :  { %9 = vsyncpa [#allocation5], 0  ;;  %s540_s12 = smov 0   ;;  %s542_s13 = smov 0  }
   0x2   :  { %s544_s14 = smov 0  }
   0x3 LB: > { %s385_s15 = sadd.s32 4294967295, %s516_s14   ;;  %s27_s16 = sadd.s32 1, %s512_s13  ;;  %s516_s14 = sphi %s544_s14, %s15_s14   ;;  %s512_s13 = sphi %s542_s13, %s639_s13   ;;  %s508_s12 = sphi %s540_s12, %s638_s12  }
   0x4   : > { %p29_p0 = scmp.ge.s32.totalorder %s27_s16, 2  ;;  %p387_p1 = scmp.ge.s32.totalorder %s516_s14, 1 }
   0x5   : > { %p130_p2 = scmp.lt.s32.totalorder %s516_s14, 3  ;;  %p565_p4 = scmp.eq.s32.totalorder %s385_s15, 0 }
   0x6   : > { %s641_s16 = smov (%p29_p0, %s27_s16), 0  ;;  %s143_s21 = sshll.u32 %s627_s1, 4  ;;  %s144_s21 = int_to_ptr.vmem [resolvable:$true] %s143_s21 }
   0x7   : > { %p561_p3 = pnand %p387_p1, %p130_p2  ;;  %s154_s24 = sshll.u32 %s628_s2, 4  ;;  %s155_s24 = int_to_ptr.vmem [resolvable:$true] %s154_s24 }
   0x8   : > { %s634_s18 = scalar_select %p565_p4, 1, 0 }
   0x9   : > { %s633_s17 = scalar_select %p561_p3, 1, 0 }
   0xa   : > { %p419_p5 = pneg %p561_p3  ;;  %s456_s26 = scalar_lea.vmem %s144_s21, 16 }
   0xb   : > { %p457_p7 = scmp.ne.s32.totalorder %s144_s21, %s456_s26  ;;  %p464_p11 = scmp.lt.s32.totalorder %s144_s21, %s144_s21 }
   0xc   : > { %p579_p6 = pnand %p565_p4, %p419_p5  ;;  %p465_p12 = scmp.lt.s32.totalorder %s456_s26, %s456_s26 }
   0xe   : > { %p458_p8 = pneg %p579_p6  ;;  %p466_p13 = por %p465_p12, %p464_p11 }
  0x10   : > { %p459_p9 = pnand %p458_p8, %p457_p7 }
  0x12   : > { %p460_p10 = pneg %p459_p9 }
  0x14   : > { %p467_p0 = pnand %p466_p13, %p460_p10 }
  0x16   : > { %470 = shalt.err (!%p467_p0)
}
  0x17   : > { %s518_s27 = smov [#allocation2]   ;;  %s471_s28 = scalar_lea.vmem %s155_s24, 16 }
  0x18   : > { %422 = dma.vmem_to_smem (!%p579_p6), %s144_s21, 16, %s518_s27, [#allocation3]  }
  0x19   : > { %p472_p1 = scmp.ne.s32.totalorder %s155_s24, %s471_s28  ;;  %p479_p4 = scmp.lt.s32.totalorder %s155_s24, %s155_s24 }
  0x1a   : > { %p480_p3 = scmp.lt.s32.totalorder %s471_s28, %s471_s28 }
  0x1b   : > { %p474_p2 = pnand %p472_p1, %p458_p8 }
  0x1c   : > { %p481_p7 = por %p480_p3, %p479_p4 }
  0x1d   : > { %p475_p5 = pneg %p474_p2 }
  0x1f   : > { %p482_p9 = pnand %p481_p7, %p475_p5 }
  0x21   : > { %485 = shalt.err (!%p482_p9)
}
  0x22   : > { %s519_s29 = smov [#allocation4]   ;;  %p636_p10 = scmp.ne.s32.totalorder %s633_s17, 0 }
  0x23   : > { %425 = dma.vmem_to_smem (!%p579_p6), %s155_s24, 16, %s519_s29, [#allocation5]  }
  0x24   : > { %177 = sbr.rel (%p636_p10) target bundleno = 79 (0x4f), region = 32  ;;  %p637_p11 = scmp.ne.s32.totalorder (!%p636_p10), %s634_s18, 0 }
  0x2b   : > { %499 = dma.done.wait (%p637_p11), [#allocation3], 16  }
  0x2c   : > { %501 = vsyncadd (%p637_p11), [#allocation3], 4294967280 }
  0x2d   : > { %503 = dma.done.wait (%p637_p11), [#allocation5], 16  }
  0x2e   : > { %505 = vsyncadd (%p637_p11), [#allocation5], 4294967280 }
  0x2f   : > { %187 = sfence }
  0x30   : > { %p210_p3 = scmp.lt.s32.totalorder %s508_s12, 1  ;;  %s229_s30 = sld [smem:[#allocation2]] }
  0x31   : > { %s396_s4 = sld [smem:[#allocation2 + $0x1]]  ;;  %s397_s5 = sld [smem:[#allocation2 + $0x2]] }
  0x32   : > { %s643_s12 = smov (!%p210_p3, %s508_s12), 1  ;;  %s240_s6 = sld [smem:[#allocation4]] }
  0x33   : > { %s398_s7 = sld [smem:[#allocation2 + $0x3]]  ;;  %s410_s8 = smul.u32 3, %s643_s12 }
  0x34   : > { %s399_s9 = sld [smem:[#allocation2 + $0x4]]  ;;  %s400_s10 = sld [smem:[#allocation2 + $0x5]] }
  0x35   : > { %s216_s17 = scalar_lea.vmem %s626_s0, %s410_s8  ;;  %s609_s18 = sld [smem:[#allocation4 + $0x1]] }
  0x36   : > { %v230_v0 = vstv %s229_s30  ;;  %v224_v1 = vld [vmem:[%s216_s17] sm:$0x1]  ;;  %v394_v2 = vld [vmem:[%s216_s17 + $0x1] sm:$0x1]  ;;  %v395_v3 = vld [vmem:[%s216_s17 + $0x2] sm:$0x1]  ;;  %s223_s25 = scalar_lea.vmem %s629_s3, %s410_s8 }
  0x37   : > { %v233_v4 = vstv %s396_s4  ;;  %v231_v5 = vmul.f32 %v230_v0, %v224_v1  ;;  %v237_v7 = vstv %s397_s5  ;;  %s403_s19 = sld [smem:[#allocation2 + $0x6]]  ;;  %s404_s20 = sld [smem:[#allocation2 + $0x7]] }
  0x38   : > { %v234_v6 = vmul.f32 %v394_v2, %v233_v4  ;;  %v238_v8 = vmul.f32 %v395_v3, %v237_v7  ;;  %s405_s21 = sld [smem:[#allocation2 + $0x8]]  ;;  %s406_s22 = sld [smem:[#allocation4 + $0x2]]  ;;  %v241_v13 = vstv %s240_s6 }
  0x39   : > { %v249_v9 = vstv %s398_s7 }
  0x3a   : > { %v235_v10 = vadd.f32 %v234_v6, %v231_v5  ;;  %v250_v11 = vmul.f32 %v249_v9, %v224_v1  ;;  %v252_v12 = vstv %s399_s9  ;;  %v256_v15 = vstv %s400_s10 }
  0x3b   : > { %v253_v14 = vmul.f32 %v394_v2, %v252_v12  ;;  %v257_v17 = vmul.f32 %v395_v3, %v256_v15  ;;  %v260_v20 = vstv %s609_s18 }
  0x3c   : > { %v239_v16 = vadd.f32 %v238_v8, %v235_v10 }
  0x3d   : > { %v254_v18 = vadd.f32 %v253_v14, %v250_v11  ;;  %v269_v21 = vstv %s403_s19  ;;  %v272_v22 = vstv %s404_s20 }
  0x3e   : > { %v242_v19 = vadd.f32 %v241_v13, %v239_v16  ;;  %v270_v24 = vmul.f32 %v269_v21, %v224_v1  ;;  %v273_v25 = vmul.f32 %v394_v2, %v272_v22  ;;  %v276_v26 = vstv %s405_s21 }
  0x3f   : > { %v258_v23 = vadd.f32 %v257_v17, %v254_v18  ;;  %v277_v28 = vmul.f32 %v395_v3, %v276_v26  ;;  %v280_v32 = vstv %s406_s22 }
  0x40   : > { %v243_v27 = vadd.f32 3.0, %v242_v19  ;;  %v274_v30 = vadd.f32 %v273_v25, %v270_v24 }
  0x41   : > { %v261_v29 = vadd.f32 %v260_v20, %v258_v23 }
  0x42   : > { %v244_v31 = vmax.f32 %v243_v27, 0.0  ;;  %v278_v34 = vadd.f32 %v277_v28, %v274_v30 }
  0x43   : > { %v262_v33 = vadd.f32 3.0, %v261_v29 }
  0x44   : > { %v245_v35 = vmin.f32 %v244_v31, 6.0  ;;  %v281_v37 = vadd.f32 %v280_v32, %v278_v34 }
  0x45   : > { %v263_v36 = vmax.f32 %v262_v33, 0.0 }
  0x46   : > { %v246_v38 = vmul.f32 %v245_v35, %v242_v19  ;;  %v282_v40 = vadd.f32 3.0, %v281_v37 }
  0x47   : > { %v264_v39 = vmin.f32 %v263_v36, 6.0 }
  0x48   : > { %247 = vst [vmem:[%s223_s25] sm:$0x1] %v246_v38  ;;  %v283_v42 = vmax.f32 %v282_v40, 0.0 }
  0x49   : > { %v265_v41 = vmul.f32 %v264_v39, %v261_v29 }
  0x4a   : > { %v284_v43 = vmin.f32 %v283_v42, 6.0 }
  0x4b   : > { %402 = vst [vmem:[%s223_s25 + $0x1] sm:$0x1] %v265_v41 }
  0x4c   : > { %v285_v44 = vmul.f32 %v284_v43, %v281_v37 }
  0x4e   : > { %407 = vst [vmem:[%s223_s25 + $0x2] sm:$0x1] %v285_v44 }
  0x4f PF: > { %s15_s14 = sadd.s32 1, %s516_s14   ;;  %s638_s12 = smov %s512_s13 }
  0x50   : > { %p12_p4 = scmp.ge.s32.totalorder %s15_s14, 4   ;;  %s639_s13 = smov %s641_s16 }
  0x52   :  { %14 = sbr.rel (!%p12_p4) target bundleno = 3 (0x3), region = 75 }
  0x59   :  { %313 = vsyncpa [#allocation3], 1 }
  0x5a   :  { %315 = vsyncpa [#allocation3 + $0x1], 1 }
  0x5b   :  { %316 = vsyncpa [#allocation5], 1 }

</bundles_post_ra>
